<compile_context>
chip_gen: v5e
topology: v5e:2x2
jax: 0.10.0
libtpu: 0.0.40
codegen_flags: <defaults>
</compile_context>

<pallas_src>
import jax
import jax.numpy as jnp
from jax.experimental import pallas as pl
from jax.experimental.pallas import tpu as pltpu


def policy_net_kernel(xh_ref, c0_ref, w_ref, wlin_ref, blin_ref, out_ref):
    H = c0_ref.shape[1]
    O = wlin_ref.shape[1]
    B = xh_ref.shape[0]

    # Single fused MXU pass: gates = [x, h0, 1] @ [W_ih^T; W_hh^T; b]  -> (B, 4H)
    gates = jnp.dot(xh_ref[...], w_ref[...], preferred_element_type=jnp.float32)

    i_g = jax.nn.sigmoid(gates[:, 0 * H:1 * H])
    f_g = jax.nn.sigmoid(gates[:, 1 * H:2 * H])
    g_g = jnp.tanh(gates[:, 2 * H:3 * H])
    o_g = jax.nn.sigmoid(gates[:, 3 * H:4 * H])

    c1 = f_g * c0_ref[...] + i_g * g_g
    h1 = o_g * jnp.tanh(c1)

    # Linear head: o1 = h1 @ W_lin^T + b_lin                  -> (B, O)
    o1 = jnp.dot(h1, wlin_ref[...], preferred_element_type=jnp.float32) + blin_ref[...]

    # Single lane-dense output slab: [h1 | c1 | o1 | zero-pad] -> (B, slab_w)
    parts = [h1, c1, o1]
    pad = out_ref.shape[1] - (2 * H + O)
    if pad:
        parts.append(jnp.zeros((B, pad), jnp.float32))
    out_ref[...] = jnp.concatenate(parts, axis=-1).astype(out_ref.dtype)


def policy_net_forward(x, h0, c0, params):
    """Fused LSTMCell + Linear forward pass in one Pallas kernel."""
    B, I = x.shape
    H = h0.shape[1]
    w_comb, wlin_t, blin = params          # (I+H+1, 4H), (H, O), (1, O)
    O = wlin_t.shape[1]

    # Pad the output slab width to a lane multiple so the store is unmasked.
    slab_w = pl.cdiv(2 * H + O, 128) * 128

    # Host-side input fusion: xh = [x, h0, 1]  (the trailing 1 picks up the bias row).
    xh = jnp.concatenate([x, h0, jnp.ones((B, 1), x.dtype)], axis=1)

    vmem = pl.BlockSpec(memory_space=pltpu.MemorySpace.VMEM)

    slab = pl.pallas_call(
        policy_net_kernel,
        out_shape=jax.ShapeDtypeStruct((B, slab_w), jnp.float32),
        in_specs=[vmem, vmem, vmem, vmem, vmem],
        out_specs=vmem,
    )(xh, c0, w_comb, wlin_t, blin)

    h1 = slab[:, 0:H]
    c1 = slab[:, H:2 * H]
    o1 = slab[:, 2 * H:2 * H + O]
    return o1, h1, c1


def init_params(key, layers):
    """Deterministic init mirroring PyTorch default uniform(-1/sqrt(H), 1/sqrt(H)),
    pre-packed for the fused kernel."""
    in_dim, hidden, out_dim = layers
    ks = jax.random.split(key, 7)
    bound = 1.0 / jnp.sqrt(hidden)

    w_ih = jax.random.uniform(ks[0], (4 * hidden, in_dim), jnp.float32, -bound, bound)
    w_hh = jax.random.uniform(ks[1], (4 * hidden, hidden), jnp.float32, -bound, bound)
    b_ih = jax.random.uniform(ks[2], (4 * hidden,), jnp.float32, -bound, bound)
    b_hh = jax.random.uniform(ks[3], (4 * hidden,), jnp.float32, -bound, bound)
    w_lin = jax.random.uniform(ks[4], (out_dim, hidden), jnp.float32, -bound, bound)
    b_lin = jax.random.uniform(ks[5], (out_dim,), jnp.float32, -bound, bound)

    # Stack [W_ih^T; W_hh^T; (b_ih + b_hh)] -> (I + H + 1, 4H) so one matmul does it all.
    w_comb = jnp.concatenate(
        [w_ih.T, w_hh.T, (b_ih + b_hh).reshape(1, 4 * hidden)], axis=0)
    wlin_t = w_lin.T                          # (H, O)
    blin = b_lin.reshape(1, out_dim)          # (1, O)
    return (w_comb, wlin_t, blin)


def reference_forward(x, h0, c0, params):
    """Pure-JAX reference of PyTorch LSTMCell + Linear semantics."""
    w_comb, wlin_t, blin = params
    I = x.shape[1]
    H = h0.shape[1]
    wih_t = w_comb[:I]
    whh_t = w_comb[I:I + H]
    b = w_comb[I + H:I + H + 1]
    gates = x @ wih_t + h0 @ whh_t + b
    i_g = jax.nn.sigmoid(gates[:, 0 * H:1 * H])
    f_g = jax.nn.sigmoid(gates[:, 1 * H:2 * H])
    g_g = jnp.tanh(gates[:, 2 * H:3 * H])
    o_g = jax.nn.sigmoid(gates[:, 3 * H:4 * H])
    c1 = f_g * c0 + i_g * g_g
    h1 = o_g * jnp.tanh(c1)
    o1 = h1 @ wlin_t + blin
    return o1, h1, c1


if __name__ == "__main__":
    layers = [16, 32, 4]   # [input_size, hidden_size, output_size]
    B = 8

    key = jax.random.PRNGKey(0)
    k_x, k_h, k_c, k_p = jax.random.split(key, 4)
    x = jax.random.normal(k_x, (B, layers[0]), jnp.float32)
    h0 = jax.random.normal(k_h, (B, layers[1]), jnp.float32)
    c0 = jax.random.normal(k_c, (B, layers[1]), jnp.float32)
    params = init_params(k_p, layers)

    o1, h1, c1 = jax.block_until_ready(policy_net_forward(x, h0, c0, params))

    # Correctness check against pure-JAX reference.
    o1_r, h1_r, c1_r = reference_forward(x, h0, c0, params)
    assert jnp.allclose(o1, o1_r, atol=1e-5, rtol=1e-5)
    assert jnp.allclose(h1, h1_r, atol=1e-5, rtol=1e-5)
    assert jnp.allclose(c1, c1_r, atol=1e-5, rtol=1e-5)

    print("KERNEL_OK")
</pallas_src>

<mosaic_0001>
module attributes {stable_mosaic.version = 11 : i64} {
  func.func @policy_net_kernel(%arg0: memref<8x49xf32, #tpu.memory_space<vmem>>, %arg1: memref<8x32xf32, #tpu.memory_space<vmem>>, %arg2: memref<49x128xf32, #tpu.memory_space<vmem>>, %arg3: memref<32x4xf32, #tpu.memory_space<vmem>>, %arg4: memref<1x4xf32, #tpu.memory_space<vmem>>, %arg5: memref<8x128xf32, #tpu.memory_space<vmem>>) attributes {dimension_semantics = [], scalar_prefetch = 0 : i64, scratch_operands = 0 : i64, tpu.core_type = #tpu.core_type<tc>} {
    %c0 = arith.constant 0 : index
    %c0_0 = arith.constant 0 : index
    %0 = vector.load %arg0[%c0, %c0_0] : memref<8x49xf32, #tpu.memory_space<vmem>>, vector<8x49xf32>
    %c0_1 = arith.constant 0 : index
    %c0_2 = arith.constant 0 : index
    %1 = vector.load %arg2[%c0_1, %c0_2] : memref<49x128xf32, #tpu.memory_space<vmem>>, vector<49x128xf32>
    %cst = arith.constant dense<0.000000e+00> : vector<8x128xf32>
    %2 = tpu.matmul %0, %1, %cst {dimension_numbers = #tpu.dot_dimension_numbers<[1], [0], [0], [1], [0, 0, 1, 1], [], []>} : vector<8x49xf32>, vector<49x128xf32>, vector<8x128xf32> -> vector<8x128xf32>
    %3 = vector.extract_strided_slice %2 {offsets = [0, 0], sizes = [8, 32], strides = [1, 1]} : vector<8x128xf32> to vector<8x32xf32>
    %4 = arith.negf %3 : vector<8x32xf32>
    %5 = math.exp %4 : vector<8x32xf32>
    %cst_3 = arith.constant 1.000000e+00 : f32
    %6 = vector.broadcast %cst_3 : f32 to vector<8x32xf32>
    %7 = arith.addf %6, %5 : vector<8x32xf32>
    %8 = arith.divf %6, %7 : vector<8x32xf32>
    %9 = vector.extract_strided_slice %2 {offsets = [0, 32], sizes = [8, 32], strides = [1, 1]} : vector<8x128xf32> to vector<8x32xf32>
    %10 = arith.negf %9 : vector<8x32xf32>
    %11 = math.exp %10 : vector<8x32xf32>
    %cst_4 = arith.constant 1.000000e+00 : f32
    %12 = vector.broadcast %cst_4 : f32 to vector<8x32xf32>
    %13 = arith.addf %12, %11 : vector<8x32xf32>
    %14 = arith.divf %12, %13 : vector<8x32xf32>
    %15 = vector.extract_strided_slice %2 {offsets = [0, 64], sizes = [8, 32], strides = [1, 1]} : vector<8x128xf32> to vector<8x32xf32>
    %16 = math.tanh %15 : vector<8x32xf32>
    %17 = vector.extract_strided_slice %2 {offsets = [0, 96], sizes = [8, 32], strides = [1, 1]} : vector<8x128xf32> to vector<8x32xf32>
    %18 = arith.negf %17 : vector<8x32xf32>
    %19 = math.exp %18 : vector<8x32xf32>
    %cst_5 = arith.constant 1.000000e+00 : f32
    %20 = vector.broadcast %cst_5 : f32 to vector<8x32xf32>
    %21 = arith.addf %20, %19 : vector<8x32xf32>
    %22 = arith.divf %20, %21 : vector<8x32xf32>
    %c0_6 = arith.constant 0 : index
    %c0_7 = arith.constant 0 : index
    %23 = vector.load %arg1[%c0_6, %c0_7] : memref<8x32xf32, #tpu.memory_space<vmem>>, vector<8x32xf32>
    %24 = arith.mulf %14, %23 : vector<8x32xf32>
    %25 = arith.mulf %8, %16 : vector<8x32xf32>
    %26 = arith.addf %24, %25 : vector<8x32xf32>
    %27 = math.tanh %26 : vector<8x32xf32>
    %28 = arith.mulf %22, %27 : vector<8x32xf32>
    %c0_8 = arith.constant 0 : index
    %c0_9 = arith.constant 0 : index
    %29 = vector.load %arg3[%c0_8, %c0_9] : memref<32x4xf32, #tpu.memory_space<vmem>>, vector<32x4xf32>
    %cst_10 = arith.constant dense<0.000000e+00> : vector<8x4xf32>
    %30 = tpu.matmul %28, %29, %cst_10 {dimension_numbers = #tpu.dot_dimension_numbers<[1], [0], [0], [1], [0, 0, 1, 1], [], []>} : vector<8x32xf32>, vector<32x4xf32>, vector<8x4xf32> -> vector<8x4xf32>
    %c0_11 = arith.constant 0 : index
    %c0_12 = arith.constant 0 : index
    %31 = vector.load %arg4[%c0_11, %c0_12] : memref<1x4xf32, #tpu.memory_space<vmem>>, vector<1x4xf32>
    %32 = vector.broadcast %31 : vector<1x4xf32> to vector<8x4xf32>
    %33 = arith.addf %30, %32 : vector<8x4xf32>
    %cst_13 = arith.constant 0.000000e+00 : f32
    %34 = vector.broadcast %cst_13 : f32 to vector<8x60xf32>
    %35 = tpu.concatenate %28, %26, %33, %34 in 1 : vector<8x32xf32>, vector<8x32xf32>, vector<8x4xf32>, vector<8x60xf32> -> vector<8x128xf32>
    %c0_14 = arith.constant 0 : index
    %c0_15 = arith.constant 0 : index
    %36 = vector.load %arg5[%c0_14, %c0_15] : memref<8x128xf32, #tpu.memory_space<vmem>>, vector<8x128xf32>
    tpu.vector_store %arg5[%c0_14, %c0_15], %35 {strides = array<i32>} : memref<8x128xf32, #tpu.memory_space<vmem>>, vector<8x128xf32>,
    return
  }
}

</mosaic_0001>

<bundles_post_ra>
// kernel: tpu_custom_call.1
= control target key start
LH: loop header
LB: loop body
LE: loop exit
PB: predicated region body
PF: predicated region fallthrough
CT: control target
= control target key end

     0   :  { %10 = vsyncpa [#allocation3], 0  ;;  %s317_s0 = inlined_call_operand.vmem [shape: f32[8,49], index: 0, kind: input, shape index: {}]   ;;  %s318_s1 = inlined_call_operand.vmem [shape: f32[8,32], index: 1, kind: input, shape index: {}]   ;;  %s319_s2 = inlined_call_operand.hbm [shape: f32[49,128], index: 2, kind: input, shape index: {}]   ;;  %s320_s3 = inlined_call_operand.vmem [shape: f32[32,4], index: 3, kind: input, shape index: {}]   ;;  %s321_s4 = inlined_call_operand.vmem [shape: f32[1,4], index: 4, kind: input, shape index: {}]   ;;  %s322_s5 = inlined_call_operand.hbm [shape: f32[8,128], index: 5, kind: output, shape index: {}]  }
   0x1   :  { %11 = vsyncpa [#allocation4], 0  ;;  %s20_s20 = sshll.u32 %s319_s2, 4  ;;  %s248_s21 = smov [#allocation2]   ;;  %s21_s20 = int_to_ptr.hbm [resolvable:$true] %s20_s20 }
   0x2   :  { %s22_s22 = sshll.u32 %s248_s21, 4  ;;  %s249_s23 = smov 128   ;;  %s23_s22 = int_to_ptr.vmem [resolvable:$true] %s22_s22 }
   0x3   :  { %s250_s24 = smov 8  }
   0x4   :  { %28 = dma.hbm_to_vmem [thread:$0]  %s21_s20, 896, %s23_s22, [#allocation3], %s249_s23, %s249_s23, %s250_s24  }
   0x5   :  { %244 = dma.done.wait [#allocation3], 896  }
   0x6   :  { %245 = vsyncadd [#allocation3], 4294966400  ;;  %vm49_vm0 = vcmask 1040384   ;;  %v44_v0 = vld [vmem:[#allocation2 + $0x30] sm:$0x1]  ;;  %v43_v1 = vld [vmem:[#allocation2 + $0x28] sm:$0xff] }
   0x7   :  { %177 = vmatpush.msk.msra.mxu0 %vm49_vm0, %v44_v0  ;;  %v42_v2 = vld [vmem:[#allocation2 + $0x20] sm:$0xff]  ;;  %v41_v3 = vld [vmem:[#allocation2 + $0x18] sm:$0xff]  ;;  %v40_v4 = vld [vmem:[#allocation2 + $0x10] sm:$0xff]  ;;  %vm45_vm1 = vcmask 400384   ;;  %s251_s26 = smov 64   ;;  %s252_s29 = smov 32  }
   0x8   :  { %v39_v5 = vld [vmem:[#allocation2 + $0x8] sm:$0xff]  ;;  %v38_v6 = vld [vmem:[#allocation2] sm:$0xff]  ;;  %v118_v31 = vld [vmem:[%s320_s3 + $0x18] sm:$0xff]  ;;  %vm126_vm6 = vcmask 261120   ;;  %vm155_vm7 = vcmask 523264   ;;  %s253_s13 = smov [#allocation5]  }
   0x9   :  { %63 = vmatpush.msra.mxu0 %v43_v1  ;;  %v37_v7 = vld [vmem:[%s317_s0] sm:$0xff]  ;;  %v117_v32 = vld [vmem:[%s320_s3 + $0x10] sm:$0xff]  ;;  %141 = vmatpush.msra.mxu1 %v118_v31  ;;  %v116_v33 = vld [vmem:[%s320_s3 + $0x8] sm:$0xff]  ;;  %s167_s16 = sshll.u32 %s322_s5, 4  ;;  %vm157_vm8 = vcmask 556032   ;;  %s168_s16 = int_to_ptr.hbm [resolvable:$true] %s167_s16 }
   0xa   :  { %v93_v10 = vld [vmem:[%s318_s1] sm:$0xff] }
   0xb   :  { %64 = vmatpush.msra.mxu0 %v42_v2  ;;  %142 = vmatpush.msra.mxu1 %v117_v32  ;;  %v115_v34 = vld [vmem:[%s320_s3] sm:$0xff]  ;;  %s165_s3 = sshll.u32 %s253_s13, 4  ;;  %s166_s3 = int_to_ptr.vmem [resolvable:$true] %s165_s3 }
   0xc   :  { %v187_v38 = vld [vmem:[%s321_s4] ss:$0 sm:$0xff] }
   0xd   :  { %65 = vmatpush.msra.mxu0 %v41_v3  ;;  %143 = vmatpush.msra.mxu1 %v116_v33 }
   0xf   :  { %66 = vmatpush.msra.mxu0 %v40_v4  ;;  %144 = vmatpush.msra.mxu1 %v115_v34 }
  0x11   :  { %67 = vmatpush.msra.mxu0 %v39_v5 }
  0x13   :  { %68 = vmatpush.msra.mxu0 %v38_v6 }
  0x14   :  { %178 = vmatmul.msk.f32.vlgmr.msra.gmra.mxu0 %vm45_vm1, %v37_v7 }
  0x91   :  { %v70_v8 = vpop.f32.mrf.mxu0 }
  0x92   :  { %188 = vtanh.f32 %v70_v8  ;;  %v179_v11 = vmul.f32 -1.442695, %v70_v8 }
  0x94   :  { %190 = vpow2.f32 %v179_v11 }
  0x98   :  { %v189_v9 = vpop.eup %188 }
  0x99   :  { %100 = vrot.lane.b32.xlu0 %v189_v9, %s251_s26 }
  0x9a   :  { %v191_v12 = vpop.eup %190 }
  0x9b   :  { %v76_v13 = vadd.f32 1.0, %v191_v12 }
  0x9d   :  { %192 = vrcp.f32 %v76_v13  ;;  %v88_v19 = vand.u32 2147483648, %v76_v13  ;;  %vm82_vm3 = vweird.f32 %v76_v13  ;;  %v86_v20 = vand.u32 2147483647, %v76_v13 }
  0x9f   :  { %v89_v22 = vor.u32 1.1754944e-38, %v88_v19  ;;  %vm87_vm5 = vcmp.eq.f32.partialorder %v86_v20, 8.507059e+37 }
  0xa1   :  { %95 = vrot.lane.b32.xlu0 %v93_v10, %s252_s29 }
  0xa3   :  { %v193_v14 = vpop.eup %192 }
  0xa4   :  { %v78_v15 = vmul.f32 %v193_v14, %v76_v13  ;;  %vm83_vm2 = vweird.f32 %v193_v14 }
  0xa5   :  { %vm84_vm4 = vmor %vm82_vm3, %vm83_vm2 }
  0xa6   :  { %v79_v16 = vsub.f32 1.0, %v78_v15 }
  0xa8   :  { %v80_v17 = vmul.f32 %v193_v14, %v79_v16 }
  0xaa   :  { %v81_v18 = vadd.f32 %v193_v14, %v80_v17 }
  0xac   :  { %v85_v21 = vsel %vm84_vm4, %v193_v14, %v81_v18 }
  0xad   :  { %v90_v24 = vsel %vm87_vm5, %v89_v22, %v85_v21 }
 0x10b   :  { %v101_v23 = vpop.permute.xlu0 %100 }
 0x10c   :  { %v103_v25 = vmul.f32 %v101_v23, %v90_v24 }
 0x10e   :  { %105 = vrot.lane.b32.xlu1 %v103_v25, %s252_s29 }
 0x113   :  { %v96_v26 = vpop.permute.xlu0 %95 }
 0x114   :  { %v98_v27 = vmul.f32 %v96_v26, %v90_v24 }
 0x180   :  { %v106_v28 = vpop.permute.xlu1 %105 }
 0x181   :  { %v108_v29 = vadd.f32 %v106_v28, %v98_v27 }
 0x183   :  { %194 = vtanh.f32 %v108_v29 }
 0x189   :  { %v195_v30 = vpop.eup %194 }
 0x18a   :  { %111 = vrot.lane.b32.xlu1 %v195_v30, %s251_s26 }
 0x1fc   :  { %v112_v35 = vpop.permute.xlu1 %111 }
 0x1fd   :  { %v114_v36 = vmul.f32 %v112_v35, %v90_v24 }
 0x1ff   :  { %124 = vrot.lane.b32.xlu2 %v114_v36, %s252_s29 }
 0x259   :  { %v125_v37 = vpop.permute.xlu2 %124 }
 0x25a   :  { %180 = vmatmul.msk.f32.vlgmr.msra.gmra.mxu1 %vm126_vm6, %v125_v37  ;;  %v154_v41 = vsel %vm126_vm6, %v125_v37, %v108_v29 }
 0x2d7   :  { %v146_v39 = vpop.f32.mrf.mxu1 }
 0x2d8   :  { %v147_v40 = vadd.f32 %v187_v38, %v146_v39 }
 0x2da   :  { %151 = vrot.lane.b32.xlu2 %v147_v40, %s251_s26 }
 0x334   :  { %v152_v42 = vpop.permute.xlu2 %151 }
 0x335   :  { %v156_v43 = vsel %vm155_vm7, %v154_v41, %v152_v42 }
 0x336   :  { %v158_v44 = vsel %vm157_vm8, %v156_v43, 0.0 }
 0x337   :  { %159 = vst [vmem:[#allocation5] sm:$0xff] %v158_v44 }
 0x338   :  { %170 = dma.vmem_to_hbm [thread:$0]  %s166_s3, 128, %s168_s16, [#allocation4]  }
 0x339   :  { %246 = dma.done.wait [#allocation4], 128  }
 0x33a   :  { %247 = vsyncadd [#allocation4], 4294967168 }
 0x33b   :  { %175 = vsyncpa [#allocation3], 1 }
 0x33c   :  { %176 = vsyncpa [#allocation4], 1 }

</bundles_post_ra>
